<compile_context>
chip_gen: v7x
topology: tpu7x:2x2x1
jax: 0.10.0
libtpu: 0.0.40
codegen_flags: <defaults>
</compile_context>

<pallas_src>
import math
import functools

import jax
import jax.numpy as jnp
import numpy as np
from jax.experimental import pallas as pl
from jax.experimental.pallas import tpu as pltpu


def _mha_kernel(vl_ref,                              # (B, Lq, 1) int32 valid lens
                q_ref, k_ref, v_ref,                 # (B, Lq, Dq), (B, Lk, Dk), (B, Lk, Dv)
                wq_ref, wk_ref, wv_ref, wo_ref,      # pre-transposed: (Dq,H),(Dk,H),(Dv,H),(H,H)
                o_ref,                               # (B, Lq, H)
                *, num_heads: int):
    B, Lq, Dq = q_ref.shape
    _, Lk, Dk = k_ref.shape
    _, _, Dv = v_ref.shape
    H = wq_ref.shape[1]
    dh = H // num_heads
    scale = 1.0 / math.sqrt(dh)

    # ---- Q/K/V projections: one matmul each over the whole flattened batch ----
    # (Lq, Lk are multiples of 8 here, so leading-dim merges are layout-trivial.)
    q2 = q_ref[...].reshape(B * Lq, Dq)
    k2 = k_ref[...].reshape(B * Lk, Dk)
    v2 = v_ref[...].reshape(B * Lk, Dv)

    Q = jnp.dot(q2, wq_ref[...], preferred_element_type=jnp.float32) * scale  # scale folded once
    K = jnp.dot(k2, wk_ref[...], preferred_element_type=jnp.float32)
    V = jnp.dot(v2, wv_ref[...], preferred_element_type=jnp.float32)

    Q = Q.reshape(B, Lq, H)
    K = K.reshape(B, Lk, H)
    V = V.reshape(B, Lk, H)

    # ---- mask (shared across heads): key position < valid_len -----------------
    col_ids = jax.lax.broadcasted_iota(jnp.int32, (B, Lq, Lk), 2)
    valid = col_ids < vl_ref[...]                      # (B, Lq, Lk) bool

    wo_t = wo_ref[...]                                 # (H, H), already W_o^T

    out = jnp.zeros((B * Lq, H), jnp.float32)
    for h in range(num_heads):                         # unrolled; num_heads is small
        sl = slice(h * dh, (h + 1) * dh)
        Qh = Q[:, :, sl]                               # (B, Lq, dh)
        Kh = K[:, :, sl]                               # (B, Lk, dh)
        Vh = V[:, :, sl]                               # (B, Lk, dh)

        s = jnp.einsum('bqd,bkd->bqk', Qh, Kh,
                       preferred_element_type=jnp.float32)      # (B, Lq, Lk)
        s = jnp.where(valid, s, jnp.float32(-1000000.0))        # same value as the module

        # numerically-stable softmax; reciprocal goes to the EUP slot
        m = jnp.max(s, axis=-1, keepdims=True)
        e = jnp.exp(s - m)
        denom = jnp.sum(e, axis=-1, keepdims=True)
        attn = e * pl.reciprocal(denom, approx=True)

        ctx = jnp.einsum('bqk,bkd->bqd', attn, Vh,
                         preferred_element_type=jnp.float32)    # (B, Lq, dh)

        # fold head-concat + W_o: accumulate ctx_h @ W_o^T[h*dh:(h+1)*dh, :]
        out = out + jnp.dot(ctx.reshape(B * Lq, dh), wo_t[sl, :],
                            preferred_element_type=jnp.float32)

    o_ref[...] = out.reshape(B, Lq, H).astype(o_ref.dtype)


def multi_head_attention(queries, keys, values, valid_lens,
                         wq, wk, wv, wo, num_heads):
    """queries: (B, Lq, Dq), keys: (B, Lk, Dk), values: (B, Lk, Dv),
    valid_lens: None | (B,) | (B, Lq).  Weights use torch.nn.Linear layout
    (out_features, in_features), bias=False.  Returns (B, Lq, num_hiddens)."""
    B, Lq, Dq = queries.shape
    _, Lk, Dk = keys.shape
    _, _, Dv = values.shape
    H = wq.shape[0]

    # One-time transposes outside the kernel (cheap; fused/folded under jit).
    wq_t, wk_t, wv_t, wo_t = wq.T, wk.T, wv.T, wo.T

    # Normalize valid_lens to per-(batch, query) int32 of shape (B, Lq, 1).
    if valid_lens is None:
        vl = jnp.full((B, Lq), Lk, dtype=jnp.int32)
    elif valid_lens.ndim == 1:
        vl = jnp.broadcast_to(valid_lens.astype(jnp.int32)[:, None], (B, Lq))
    else:
        vl = valid_lens.astype(jnp.int32)
    vl = vl.reshape(B, Lq, 1)

    kernel = functools.partial(_mha_kernel, num_heads=num_heads)

    # Advisory cost estimate for the XLA scheduler.
    flops = 2 * B * H * (Lq * Dq + Lk * Dk + Lk * Dv)   # projections
    flops += 4 * B * Lq * Lk * H                        # scores + context (all heads)
    flops += 2 * B * Lq * H * H                         # output projection
    transcendentals = B * num_heads * Lq * Lk           # exp in softmax
    bytes_accessed = 4 * (B * Lq * Dq + B * Lk * Dk + B * Lk * Dv
                          + Dq * H + Dk * H + Dv * H + H * H
                          + B * Lq * H + B * Lq)

    return pl.pallas_call(
        kernel,
        out_shape=jax.ShapeDtypeStruct((B, Lq, H), jnp.float32),
        grid=(1,),  # single step: whole problem resident in VMEM at these sizes
        in_specs=[
            pl.BlockSpec((B, Lq, 1), lambda i: (0, 0, 0)),
            pl.BlockSpec((B, Lq, Dq), lambda i: (0, 0, 0)),
            pl.BlockSpec((B, Lk, Dk), lambda i: (0, 0, 0)),
            pl.BlockSpec((B, Lk, Dv), lambda i: (0, 0, 0)),
            pl.BlockSpec((Dq, H), lambda i: (0, 0)),
            pl.BlockSpec((Dk, H), lambda i: (0, 0)),
            pl.BlockSpec((Dv, H), lambda i: (0, 0)),
            pl.BlockSpec((H, H), lambda i: (0, 0)),
        ],
        out_specs=pl.BlockSpec((B, Lq, H), lambda i: (0, 0, 0)),
        compiler_params=pltpu.CompilerParams(
            dimension_semantics=("arbitrary",)),
        cost_estimate=pl.CostEstimate(flops=int(flops),
                                      transcendentals=int(transcendentals),
                                      bytes_accessed=int(bytes_accessed)),
    )(vl, queries, keys, values, wq_t, wk_t, wv_t, wo_t)


def _reference(queries, keys, values, valid_lens, wq, wk, wv, wo, num_heads):
    """Pure-JAX reference mirroring the PyTorch module (1-D valid_lens)."""
    B, Lq, _ = queries.shape
    Lk = keys.shape[1]
    H = wq.shape[0]
    dh = H // num_heads

    def proj_heads(x, w):
        y = jnp.einsum('bld,hd->blh', x, w)                    # (B, L, H)
        y = y.reshape(B, -1, num_heads, dh).transpose(0, 2, 1, 3)
        return y.reshape(B * num_heads, -1, dh)

    Q = proj_heads(queries, wq)
    K = proj_heads(keys, wk)
    V = proj_heads(values, wv)

    scores = jnp.einsum('bqd,bkd->bqk', Q, K) / math.sqrt(dh)
    vl = jnp.repeat(valid_lens, num_heads)                     # (B*nh,)
    mask = jnp.arange(Lk)[None, None, :] < vl[:, None, None]
    scores = jnp.where(mask, scores, -1000000.0)
    attn = jax.nn.softmax(scores, axis=-1)
    out = jnp.einsum('bqk,bkd->bqd', attn, V)                  # (B*nh, Lq, dh)
    out = out.reshape(B, num_heads, Lq, dh).transpose(0, 2, 1, 3).reshape(B, Lq, H)
    return jnp.einsum('blh,oh->blo', out, wo)


if __name__ == "__main__":
    B, Lq, Lk = 2, 8, 8
    query_size = key_size = value_size = 32
    num_hiddens = 32
    num_heads = 4

    key = jax.random.PRNGKey(0)
    ks = jax.random.split(key, 8)
    queries = jax.random.normal(ks[0], (B, Lq, query_size), dtype=jnp.float32)
    keys_in = jax.random.normal(ks[1], (B, Lk, key_size), dtype=jnp.float32)
    values = jax.random.normal(ks[2], (B, Lk, value_size), dtype=jnp.float32)
    valid_lens = jnp.array([3, 8], dtype=jnp.int32)

    # nn.Linear weights: (out_features, in_features), bias=False
    wq = jax.random.normal(ks[3], (num_hiddens, query_size), dtype=jnp.float32) * 0.1
    wk = jax.random.normal(ks[4], (num_hiddens, key_size), dtype=jnp.float32) * 0.1
    wv = jax.random.normal(ks[5], (num_hiddens, value_size), dtype=jnp.float32) * 0.1
    wo = jax.random.normal(ks[6], (num_hiddens, num_hiddens), dtype=jnp.float32) * 0.1

    out = multi_head_attention(queries, keys_in, values, valid_lens,
                               wq, wk, wv, wo, num_heads)
    out = jax.block_until_ready(out)

    ref = _reference(queries, keys_in, values, valid_lens,
                     wq, wk, wv, wo, num_heads)
    # approx reciprocal in the softmax denominator -> slightly looser tolerance
    np.testing.assert_allclose(np.asarray(out), np.asarray(ref),
                               rtol=2e-3, atol=2e-3)
    print("KERNEL_OK")
</pallas_src>

<mosaic_0001>
module attributes {stable_mosaic.version = 11 : i64} {
  func.func @_mha_kernel(%arg0: i32, %arg1: memref<2x8x1xi32, #tpu.memory_space<vmem>>, %arg2: memref<2x8x32xf32, #tpu.memory_space<vmem>>, %arg3: memref<2x8x32xf32, #tpu.memory_space<vmem>>, %arg4: memref<2x8x32xf32, #tpu.memory_space<vmem>>, %arg5: memref<32x32xf32, #tpu.memory_space<vmem>>, %arg6: memref<32x32xf32, #tpu.memory_space<vmem>>, %arg7: memref<32x32xf32, #tpu.memory_space<vmem>>, %arg8: memref<32x32xf32, #tpu.memory_space<vmem>>, %arg9: memref<2x8x32xf32, #tpu.memory_space<vmem>>) attributes {dimension_semantics = [#tpu.dimension_semantics<arbitrary>], iteration_bounds = array<i64: 1>, scalar_prefetch = 0 : i64, scratch_operands = 0 : i64, tpu.core_type = #tpu.core_type<tc>, window_params = [{pipeline_mode = #tpu.pipeline_mode<synchronous>, transform_indices = @transform_0, window_bounds = array<i64: 2, 8, 1>}, {pipeline_mode = #tpu.pipeline_mode<synchronous>, transform_indices = @transform_1, window_bounds = array<i64: 2, 8, 32>}, {pipeline_mode = #tpu.pipeline_mode<synchronous>, transform_indices = @transform_2, window_bounds = array<i64: 2, 8, 32>}, {pipeline_mode = #tpu.pipeline_mode<synchronous>, transform_indices = @transform_3, window_bounds = array<i64: 2, 8, 32>}, {pipeline_mode = #tpu.pipeline_mode<synchronous>, transform_indices = @transform_4, window_bounds = array<i64: 32, 32>}, {pipeline_mode = #tpu.pipeline_mode<synchronous>, transform_indices = @transform_5, window_bounds = array<i64: 32, 32>}, {pipeline_mode = #tpu.pipeline_mode<synchronous>, transform_indices = @transform_6, window_bounds = array<i64: 32, 32>}, {pipeline_mode = #tpu.pipeline_mode<synchronous>, transform_indices = @transform_7, window_bounds = array<i64: 32, 32>}, {pipeline_mode = #tpu.pipeline_mode<synchronous>, transform_indices = @transform_8, window_bounds = array<i64: 2, 8, 32>}]} {
    %c0 = arith.constant 0 : index
    %c0_0 = arith.constant 0 : index
    %c0_1 = arith.constant 0 : index
    %0 = vector.load %arg2[%c0, %c0_0, %c0_1] : memref<2x8x32xf32, #tpu.memory_space<vmem>>, vector<2x8x32xf32>
    %1 = vector.shape_cast %0 : vector<2x8x32xf32> to vector<16x32xf32>
    %c0_2 = arith.constant 0 : index
    %c0_3 = arith.constant 0 : index
    %c0_4 = arith.constant 0 : index
    %2 = vector.load %arg3[%c0_2, %c0_3, %c0_4] : memref<2x8x32xf32, #tpu.memory_space<vmem>>, vector<2x8x32xf32>
    %3 = vector.shape_cast %2 : vector<2x8x32xf32> to vector<16x32xf32>
    %c0_5 = arith.constant 0 : index
    %c0_6 = arith.constant 0 : index
    %c0_7 = arith.constant 0 : index
    %4 = vector.load %arg4[%c0_5, %c0_6, %c0_7] : memref<2x8x32xf32, #tpu.memory_space<vmem>>, vector<2x8x32xf32>
    %5 = vector.shape_cast %4 : vector<2x8x32xf32> to vector<16x32xf32>
    %c0_8 = arith.constant 0 : index
    %c0_9 = arith.constant 0 : index
    %6 = vector.load %arg5[%c0_8, %c0_9] : memref<32x32xf32, #tpu.memory_space<vmem>>, vector<32x32xf32>
    %cst = arith.constant dense<0.000000e+00> : vector<16x32xf32>
    %7 = tpu.matmul %1, %6, %cst {dimension_numbers = #tpu.dot_dimension_numbers<[1], [0], [0], [1], [0, 0, 1, 1], [], []>} : vector<16x32xf32>, vector<32x32xf32>, vector<16x32xf32> -> vector<16x32xf32>
    %cst_10 = arith.constant 0.353553385 : f32
    %8 = vector.broadcast %cst_10 : f32 to vector<16x32xf32>
    %9 = arith.mulf %7, %8 : vector<16x32xf32>
    %c0_11 = arith.constant 0 : index
    %c0_12 = arith.constant 0 : index
    %10 = vector.load %arg6[%c0_11, %c0_12] : memref<32x32xf32, #tpu.memory_space<vmem>>, vector<32x32xf32>
    %cst_13 = arith.constant dense<0.000000e+00> : vector<16x32xf32>
    %11 = tpu.matmul %3, %10, %cst_13 {dimension_numbers = #tpu.dot_dimension_numbers<[1], [0], [0], [1], [0, 0, 1, 1], [], []>} : vector<16x32xf32>, vector<32x32xf32>, vector<16x32xf32> -> vector<16x32xf32>
    %c0_14 = arith.constant 0 : index
    %c0_15 = arith.constant 0 : index
    %12 = vector.load %arg7[%c0_14, %c0_15] : memref<32x32xf32, #tpu.memory_space<vmem>>, vector<32x32xf32>
    %cst_16 = arith.constant dense<0.000000e+00> : vector<16x32xf32>
    %13 = tpu.matmul %5, %12, %cst_16 {dimension_numbers = #tpu.dot_dimension_numbers<[1], [0], [0], [1], [0, 0, 1, 1], [], []>} : vector<16x32xf32>, vector<32x32xf32>, vector<16x32xf32> -> vector<16x32xf32>
    %14 = vector.shape_cast %9 : vector<16x32xf32> to vector<2x8x32xf32>
    %15 = vector.shape_cast %11 : vector<16x32xf32> to vector<2x8x32xf32>
    %16 = vector.shape_cast %13 : vector<16x32xf32> to vector<2x8x32xf32>
    %17 = tpu.iota {dimensions = array<i32: 2>} : vector<2x8x8xi32>
    %c0_17 = arith.constant 0 : index
    %c0_18 = arith.constant 0 : index
    %c0_19 = arith.constant 0 : index
    %18 = vector.load %arg1[%c0_17, %c0_18, %c0_19] : memref<2x8x1xi32, #tpu.memory_space<vmem>>, vector<2x8x1xi32>
    %19 = vector.broadcast %18 : vector<2x8x1xi32> to vector<2x8x8xi32>
    %20 = arith.cmpi slt, %17, %19 : vector<2x8x8xi32>
    %c0_20 = arith.constant 0 : index
    %c0_21 = arith.constant 0 : index
    %21 = vector.load %arg8[%c0_20, %c0_21] : memref<32x32xf32, #tpu.memory_space<vmem>>, vector<32x32xf32>
    %cst_22 = arith.constant 0.000000e+00 : f32
    %22 = vector.broadcast %cst_22 : f32 to vector<16x32xf32>
    %23 = vector.extract_strided_slice %14 {offsets = [0, 0, 0], sizes = [2, 8, 8], strides = [1, 1, 1]} : vector<2x8x32xf32> to vector<2x8x8xf32>
    %24 = vector.extract_strided_slice %15 {offsets = [0, 0, 0], sizes = [2, 8, 8], strides = [1, 1, 1]} : vector<2x8x32xf32> to vector<2x8x8xf32>
    %25 = vector.extract_strided_slice %16 {offsets = [0, 0, 0], sizes = [2, 8, 8], strides = [1, 1, 1]} : vector<2x8x32xf32> to vector<2x8x8xf32>
    "tpu.trace_start"() <{level = 10 : i32, message = "bqd,bkd->bqk"}> : () -> ()
    %cst_23 = arith.constant dense<0.000000e+00> : vector<2x8x8xf32>
    %26 = tpu.matmul %23, %24, %cst_23 {dimension_numbers = #tpu.dot_dimension_numbers<[2], [2], [1], [1], [0, 0, 0, 1, 1, 1], [0], [0]>} : vector<2x8x8xf32>, vector<2x8x8xf32>, vector<2x8x8xf32> -> vector<2x8x8xf32>
    %cst_24 = arith.constant -1.000000e+06 : f32
    "tpu.trace_stop"() : () -> ()
    %27 = vector.broadcast %cst_24 : f32 to vector<2x8x8xf32>
    %28 = arith.select %20, %26, %27 : vector<2x8x8xi1>, vector<2x8x8xf32>
    %cst_25 = arith.constant dense<0xFF800000> : vector<2x8xf32>
    %29 = vector.multi_reduction <maximumf>, %28, %cst_25 [2] : vector<2x8x8xf32> to vector<2x8xf32>
    %30 = vector.shape_cast %29 : vector<2x8xf32> to vector<2x8x1xf32>
    %31 = vector.broadcast %30 : vector<2x8x1xf32> to vector<2x8x8xf32>
    %32 = arith.subf %28, %31 : vector<2x8x8xf32>
    %33 = math.exp %32 : vector<2x8x8xf32>
    %cst_26 = arith.constant dense<0.000000e+00> : vector<2x8xf32>
    %34 = vector.multi_reduction <add>, %33, %cst_26 [2] : vector<2x8x8xf32> to vector<2x8xf32>
    %35 = vector.shape_cast %34 : vector<2x8xf32> to vector<2x8x1xf32>
    %36 = tpu.reciprocal %35 {approx = true} : vector<2x8x1xf32> -> vector<2x8x1xf32>
    %37 = vector.broadcast %36 : vector<2x8x1xf32> to vector<2x8x8xf32>
    %38 = arith.mulf %33, %37 : vector<2x8x8xf32>
    "tpu.trace_start"() <{level = 10 : i32, message = "bqk,bkd->bqd"}> : () -> ()
    %cst_27 = arith.constant dense<0.000000e+00> : vector<2x8x8xf32>
    %39 = tpu.matmul %38, %25, %cst_27 {dimension_numbers = #tpu.dot_dimension_numbers<[2], [1], [1], [2], [0, 0, 0, 1, 1, 2], [0], [0]>} : vector<2x8x8xf32>, vector<2x8x8xf32>, vector<2x8x8xf32> -> vector<2x8x8xf32>
    "tpu.trace_stop"() : () -> ()
    %40 = vector.shape_cast %39 : vector<2x8x8xf32> to vector<16x8xf32>
    %41 = vector.extract_strided_slice %21 {offsets = [0, 0], sizes = [8, 32], strides = [1, 1]} : vector<32x32xf32> to vector<8x32xf32>
    %cst_28 = arith.constant dense<0.000000e+00> : vector<16x32xf32>
    %42 = tpu.matmul %40, %41, %cst_28 {dimension_numbers = #tpu.dot_dimension_numbers<[1], [0], [0], [1], [0, 0, 1, 1], [], []>} : vector<16x8xf32>, vector<8x32xf32>, vector<16x32xf32> -> vector<16x32xf32>
    %43 = arith.addf %22, %42 : vector<16x32xf32>
    %44 = vector.extract_strided_slice %14 {offsets = [0, 0, 8], sizes = [2, 8, 8], strides = [1, 1, 1]} : vector<2x8x32xf32> to vector<2x8x8xf32>
    %45 = vector.extract_strided_slice %15 {offsets = [0, 0, 8], sizes = [2, 8, 8], strides = [1, 1, 1]} : vector<2x8x32xf32> to vector<2x8x8xf32>
    %46 = vector.extract_strided_slice %16 {offsets = [0, 0, 8], sizes = [2, 8, 8], strides = [1, 1, 1]} : vector<2x8x32xf32> to vector<2x8x8xf32>
    "tpu.trace_start"() <{level = 10 : i32, message = "bqd,bkd->bqk"}> : () -> ()
    %cst_29 = arith.constant dense<0.000000e+00> : vector<2x8x8xf32>
    %47 = tpu.matmul %44, %45, %cst_29 {dimension_numbers = #tpu.dot_dimension_numbers<[2], [2], [1], [1], [0, 0, 0, 1, 1, 1], [0], [0]>} : vector<2x8x8xf32>, vector<2x8x8xf32>, vector<2x8x8xf32> -> vector<2x8x8xf32>
    %cst_30 = arith.constant -1.000000e+06 : f32
    "tpu.trace_stop"() : () -> ()
    %48 = vector.broadcast %cst_30 : f32 to vector<2x8x8xf32>
    %49 = arith.select %20, %47, %48 : vector<2x8x8xi1>, vector<2x8x8xf32>
    %cst_31 = arith.constant dense<0xFF800000> : vector<2x8xf32>
    %50 = vector.multi_reduction <maximumf>, %49, %cst_31 [2] : vector<2x8x8xf32> to vector<2x8xf32>
    %51 = vector.shape_cast %50 : vector<2x8xf32> to vector<2x8x1xf32>
    %52 = vector.broadcast %51 : vector<2x8x1xf32> to vector<2x8x8xf32>
    %53 = arith.subf %49, %52 : vector<2x8x8xf32>
    %54 = math.exp %53 : vector<2x8x8xf32>
    %cst_32 = arith.constant dense<0.000000e+00> : vector<2x8xf32>
    %55 = vector.multi_reduction <add>, %54, %cst_32 [2] : vector<2x8x8xf32> to vector<2x8xf32>
    %56 = vector.shape_cast %55 : vector<2x8xf32> to vector<2x8x1xf32>
    %57 = tpu.reciprocal %56 {approx = true} : vector<2x8x1xf32> -> vector<2x8x1xf32>
    %58 = vector.broadcast %57 : vector<2x8x1xf32> to vector<2x8x8xf32>
    %59 = arith.mulf %54, %58 : vector<2x8x8xf32>
    "tpu.trace_start"() <{level = 10 : i32, message = "bqk,bkd->bqd"}> : () -> ()
    %cst_33 = arith.constant dense<0.000000e+00> : vector<2x8x8xf32>
    %60 = tpu.matmul %59, %46, %cst_33 {dimension_numbers = #tpu.dot_dimension_numbers<[2], [1], [1], [2], [0, 0, 0, 1, 1, 2], [0], [0]>} : vector<2x8x8xf32>, vector<2x8x8xf32>, vector<2x8x8xf32> -> vector<2x8x8xf32>
    "tpu.trace_stop"() : () -> ()
    %61 = vector.shape_cast %60 : vector<2x8x8xf32> to vector<16x8xf32>
    %62 = vector.extract_strided_slice %21 {offsets = [8, 0], sizes = [8, 32], strides = [1, 1]} : vector<32x32xf32> to vector<8x32xf32>
    %cst_34 = arith.constant dense<0.000000e+00> : vector<16x32xf32>
    %63 = tpu.matmul %61, %62, %cst_34 {dimension_numbers = #tpu.dot_dimension_numbers<[1], [0], [0], [1], [0, 0, 1, 1], [], []>} : vector<16x8xf32>, vector<8x32xf32>, vector<16x32xf32> -> vector<16x32xf32>
    %64 = arith.addf %43, %63 : vector<16x32xf32>
    %65 = vector.extract_strided_slice %14 {offsets = [0, 0, 16], sizes = [2, 8, 8], strides = [1, 1, 1]} : vector<2x8x32xf32> to vector<2x8x8xf32>
    %66 = vector.extract_strided_slice %15 {offsets = [0, 0, 16], sizes = [2, 8, 8], strides = [1, 1, 1]} : vector<2x8x32xf32> to vector<2x8x8xf32>
    %67 = vector.extract_strided_slice %16 {offsets = [0, 0, 16], sizes = [2, 8, 8], strides = [1, 1, 1]} : vector<2x8x32xf32> to vector<2x8x8xf32>
    "tpu.trace_start"() <{level = 10 : i32, message = "bqd,bkd->bqk"}> : () -> ()
    %cst_35 = arith.constant dense<0.000000e+00> : vector<2x8x8xf32>
    %68 = tpu.matmul %65, %66, %cst_35 {dimension_numbers = #tpu.dot_dimension_numbers<[2], [2], [1], [1], [0, 0, 0, 1, 1, 1], [0], [0]>} : vector<2x8x8xf32>, vector<2x8x8xf32>, vector<2x8x8xf32> -> vector<2x8x8xf32>
    %cst_36 = arith.constant -1.000000e+06 : f32
    "tpu.trace_stop"() : () -> ()
    %69 = vector.broadcast %cst_36 : f32 to vector<2x8x8xf32>
    %70 = arith.select %20, %68, %69 : vector<2x8x8xi1>, vector<2x8x8xf32>
    %cst_37 = arith.constant dense<0xFF800000> : vector<2x8xf32>
    %71 = vector.multi_reduction <maximumf>, %70, %cst_37 [2] : vector<2x8x8xf32> to vector<2x8xf32>
    %72 = vector.shape_cast %71 : vector<2x8xf32> to vector<2x8x1xf32>
    %73 = vector.broadcast %72 : vector<2x8x1xf32> to vector<2x8x8xf32>
    %74 = arith.subf %70, %73 : vector<2x8x8xf32>
    %75 = math.exp %74 : vector<2x8x8xf32>
    %cst_38 = arith.constant dense<0.000000e+00> : vector<2x8xf32>
    %76 = vector.multi_reduction <add>, %75, %cst_38 [2] : vector<2x8x8xf32> to vector<2x8xf32>
    %77 = vector.shape_cast %76 : vector<2x8xf32> to vector<2x8x1xf32>
    %78 = tpu.reciprocal %77 {approx = true} : vector<2x8x1xf32> -> vector<2x8x1xf32>
    %79 = vector.broadcast %78 : vector<2x8x1xf32> to vector<2x8x8xf32>
    %80 = arith.mulf %75, %79 : vector<2x8x8xf32>
    "tpu.trace_start"() <{level = 10 : i32, message = "bqk,bkd->bqd"}> : () -> ()
    %cst_39 = arith.constant dense<0.000000e+00> : vector<2x8x8xf32>
    %81 = tpu.matmul %80, %67, %cst_39 {dimension_numbers = #tpu.dot_dimension_numbers<[2], [1], [1], [2], [0, 0, 0, 1, 1, 2], [0], [0]>} : vector<2x8x8xf32>, vector<2x8x8xf32>, vector<2x8x8xf32> -> vector<2x8x8xf32>
    "tpu.trace_stop"() : () -> ()
    %82 = vector.shape_cast %81 : vector<2x8x8xf32> to vector<16x8xf32>
    %83 = vector.extract_strided_slice %21 {offsets = [16, 0], sizes = [8, 32], strides = [1, 1]} : vector<32x32xf32> to vector<8x32xf32>
    %cst_40 = arith.constant dense<0.000000e+00> : vector<16x32xf32>
    %84 = tpu.matmul %82, %83, %cst_40 {dimension_numbers = #tpu.dot_dimension_numbers<[1], [0], [0], [1], [0, 0, 1, 1], [], []>} : vector<16x8xf32>, vector<8x32xf32>, vector<16x32xf32> -> vector<16x32xf32>
    %85 = arith.addf %64, %84 : vector<16x32xf32>
    %86 = vector.extract_strided_slice %14 {offsets = [0, 0, 24], sizes = [2, 8, 8], strides = [1, 1, 1]} : vector<2x8x32xf32> to vector<2x8x8xf32>
    %87 = vector.extract_strided_slice %15 {offsets = [0, 0, 24], sizes = [2, 8, 8], strides = [1, 1, 1]} : vector<2x8x32xf32> to vector<2x8x8xf32>
    %88 = vector.extract_strided_slice %16 {offsets = [0, 0, 24], sizes = [2, 8, 8], strides = [1, 1, 1]} : vector<2x8x32xf32> to vector<2x8x8xf32>
    "tpu.trace_start"() <{level = 10 : i32, message = "bqd,bkd->bqk"}> : () -> ()
    %cst_41 = arith.constant dense<0.000000e+00> : vector<2x8x8xf32>
    %89 = tpu.matmul %86, %87, %cst_41 {dimension_numbers = #tpu.dot_dimension_numbers<[2], [2], [1], [1], [0, 0, 0, 1, 1, 1], [0], [0]>} : vector<2x8x8xf32>, vector<2x8x8xf32>, vector<2x8x8xf32> -> vector<2x8x8xf32>
    %cst_42 = arith.constant -1.000000e+06 : f32
    "tpu.trace_stop"() : () -> ()
    %90 = vector.broadcast %cst_42 : f32 to vector<2x8x8xf32>
    %91 = arith.select %20, %89, %90 : vector<2x8x8xi1>, vector<2x8x8xf32>
    %cst_43 = arith.constant dense<0xFF800000> : vector<2x8xf32>
    %92 = vector.multi_reduction <maximumf>, %91, %cst_43 [2] : vector<2x8x8xf32> to vector<2x8xf32>
    %93 = vector.shape_cast %92 : vector<2x8xf32> to vector<2x8x1xf32>
    %94 = vector.broadcast %93 : vector<2x8x1xf32> to vector<2x8x8xf32>
    %95 = arith.subf %91, %94 : vector<2x8x8xf32>
    %96 = math.exp %95 : vector<2x8x8xf32>
    %cst_44 = arith.constant dense<0.000000e+00> : vector<2x8xf32>
    %97 = vector.multi_reduction <add>, %96, %cst_44 [2] : vector<2x8x8xf32> to vector<2x8xf32>
    %98 = vector.shape_cast %97 : vector<2x8xf32> to vector<2x8x1xf32>
    %99 = tpu.reciprocal %98 {approx = true} : vector<2x8x1xf32> -> vector<2x8x1xf32>
    %100 = vector.broadcast %99 : vector<2x8x1xf32> to vector<2x8x8xf32>
    %101 = arith.mulf %96, %100 : vector<2x8x8xf32>
    "tpu.trace_start"() <{level = 10 : i32, message = "bqk,bkd->bqd"}> : () -> ()
    %cst_45 = arith.constant dense<0.000000e+00> : vector<2x8x8xf32>
    %102 = tpu.matmul %101, %88, %cst_45 {dimension_numbers = #tpu.dot_dimension_numbers<[2], [1], [1], [2], [0, 0, 0, 1, 1, 2], [0], [0]>} : vector<2x8x8xf32>, vector<2x8x8xf32>, vector<2x8x8xf32> -> vector<2x8x8xf32>
    "tpu.trace_stop"() : () -> ()
    %103 = vector.shape_cast %102 : vector<2x8x8xf32> to vector<16x8xf32>
    %104 = vector.extract_strided_slice %21 {offsets = [24, 0], sizes = [8, 32], strides = [1, 1]} : vector<32x32xf32> to vector<8x32xf32>
    %cst_46 = arith.constant dense<0.000000e+00> : vector<16x32xf32>
    %105 = tpu.matmul %103, %104, %cst_46 {dimension_numbers = #tpu.dot_dimension_numbers<[1], [0], [0], [1], [0, 0, 1, 1], [], []>} : vector<16x8xf32>, vector<8x32xf32>, vector<16x32xf32> -> vector<16x32xf32>
    %106 = arith.addf %85, %105 : vector<16x32xf32>
    %107 = vector.shape_cast %106 : vector<16x32xf32> to vector<2x8x32xf32>
    %c0_47 = arith.constant 0 : index
    %c0_48 = arith.constant 0 : index
    %c0_49 = arith.constant 0 : index
    %108 = vector.load %arg9[%c0_47, %c0_48, %c0_49] : memref<2x8x32xf32, #tpu.memory_space<vmem>>, vector<2x8x32xf32>
    tpu.vector_store %arg9[%c0_47, %c0_48, %c0_49], %107 {strides = array<i32>} : memref<2x8x32xf32, #tpu.memory_space<vmem>>, vector<2x8x32xf32>,
    return
  }
  func.func @transform_0(%arg0: i32) -> (i32, i32, i32) {
    %c0_i32 = arith.constant 0 : i32
    %c0_i32_0 = arith.constant 0 : i32
    %c0_i32_1 = arith.constant 0 : i32
    %c0_i32_2 = arith.constant 0 : i32
    return %c0_i32, %c0_i32_0, %c0_i32_1 : i32, i32, i32
  }
  func.func @transform_1(%arg0: i32) -> (i32, i32, i32) {
    %c0_i32 = arith.constant 0 : i32
    %c0_i32_0 = arith.constant 0 : i32
    %c0_i32_1 = arith.constant 0 : i32
    %c0_i32_2 = arith.constant 0 : i32
    return %c0_i32, %c0_i32_0, %c0_i32_1 : i32, i32, i32
  }
  func.func @transform_2(%arg0: i32) -> (i32, i32, i32) {
    %c0_i32 = arith.constant 0 : i32
    %c0_i32_0 = arith.constant 0 : i32
    %c0_i32_1 = arith.constant 0 : i32
    %c0_i32_2 = arith.constant 0 : i32
    return %c0_i32, %c0_i32_0, %c0_i32_1 : i32, i32, i32
  }
  func.func @transform_3(%arg0: i32) -> (i32, i32, i32) {
    %c0_i32 = arith.constant 0 : i32
    %c0_i32_0 = arith.constant 0 : i32
    %c0_i32_1 = arith.constant 0 : i32
    %c0_i32_2 = arith.constant 0 : i32
    return %c0_i32, %c0_i32_0, %c0_i32_1 : i32, i32, i32
  }
  func.func @transform_4(%arg0: i32) -> (i32, i32) {
    %c0_i32 = arith.constant 0 : i32
    %c0_i32_0 = arith.constant 0 : i32
    %c0_i32_1 = arith.constant 0 : i32
    return %c0_i32, %c0_i32_0 : i32, i32
  }
  func.func @transform_5(%arg0: i32) -> (i32, i32) {
    %c0_i32 = arith.constant 0 : i32
    %c0_i32_0 = arith.constant 0 : i32
    %c0_i32_1 = arith.constant 0 : i32
    return %c0_i32, %c0_i32_0 : i32, i32
  }
  func.func @transform_6(%arg0: i32) -> (i32, i32) {
    %c0_i32 = arith.constant 0 : i32
    %c0_i32_0 = arith.constant 0 : i32
    %c0_i32_1 = arith.constant 0 : i32
    return %c0_i32, %c0_i32_0 : i32, i32
  }
  func.func @transform_7(%arg0: i32) -> (i32, i32) {
    %c0_i32 = arith.constant 0 : i32
    %c0_i32_0 = arith.constant 0 : i32
    %c0_i32_1 = arith.constant 0 : i32
    return %c0_i32, %c0_i32_0 : i32, i32
  }
  func.func @transform_8(%arg0: i32) -> (i32, i32, i32) {
    %c0_i32 = arith.constant 0 : i32
    %c0_i32_0 = arith.constant 0 : i32
    %c0_i32_1 = arith.constant 0 : i32
    %c0_i32_2 = arith.constant 0 : i32
    return %c0_i32, %c0_i32_0, %c0_i32_1 : i32, i32, i32
  }
}

</mosaic_0001>

<bundles_post_ra>
// kernel: tpu_custom_call.1
= control target key start
LH: loop header
LB: loop body
LE: loop exit
PB: predicated region body
PF: predicated region fallthrough
CT: control target
= control target key end

     0   :  { %13 = vsyncpa [#allocation3], 0  ;;  %s2940_s0 = inlined_call_operand.vmem [shape: s32[2,8,1], index: 0, kind: input, shape index: {}]   ;;  %s2941_s1 = inlined_call_operand.hbm [shape: f32[2,8,32], index: 1, kind: input, shape index: {}]   ;;  %s2942_s2 = inlined_call_operand.hbm [shape: f32[2,8,32], index: 2, kind: input, shape index: {}]   ;;  %s2943_s3 = inlined_call_operand.hbm [shape: f32[2,8,32], index: 3, kind: input, shape index: {}]   ;;  %s2944_s4 = inlined_call_operand.vmem [shape: f32[32,32], index: 4, kind: input, shape index: {}]   ;;  %s2945_s5 = inlined_call_operand.hbm [shape: f32[32,32], index: 5, kind: input, shape index: {}]   ;;  %s2946_s6 = inlined_call_operand.hbm [shape: f32[32,32], index: 6, kind: input, shape index: {}]   ;;  %s2947_s7 = inlined_call_operand.hbm [shape: f32[32,32], index: 7, kind: input, shape index: {}]   ;;  %s2948_s8 = inlined_call_operand.hbm [shape: f32[2,8,32], index: 8, kind: output, shape index: {}]  }
   0x1   :  { %14 = vsyncpa [#allocation6], 0 }
   0x2   :  { %15 = vsyncpa [#allocation9], 0 }
   0x3   :  { %16 = vsyncpa [#allocation12], 0 }
   0x4   :  { %17 = vsyncpa [#allocation4], 0  ;;  %s2538_s27 = smov [#allocation5]   ;;  %s2539_s29 = smov [#allocation8]  }
   0x5   :  { %s37_s28 = sshll.u32 %s2538_s27, 4  ;;  %s63_s30 = sshll.u32 %s2539_s29, 4  ;;  %s38_s28 = int_to_ptr.vmem [resolvable:$true] %s37_s28  ;;  %s2598_s30 = int_to_ptr.vmem [resolvable:$true] %s63_s30 }
   0x6   :  { %s2374_s11 = scalar_lea.hbm %s2942_s2, 256 }
   0x7   :  { %p2375_p0 = scmp.ne.s32.totalorder %s2942_s2, %s2374_s11  ;;  %p2378_p1 = scmp.lt.u32.totalorder %s2374_s11, %s2942_s2 }
   0x9   :  { %p2380_p2 = pnand %p2378_p1, %p2375_p0 }
   0xb   :  { %2383 = shalt.err (!%p2380_p2)
}
   0xc   :  { %s2384_s16 = scalar_lea.vmem %s38_s28, 256  ;;  %p2389_p4 = scmp.lt.s32.totalorder %s38_s28, %s38_s28 }
   0xd   :  { %p2385_p3 = scmp.ne.s32.totalorder %s38_s28, %s2384_s16  ;;  %p2390_p5 = scmp.lt.s32.totalorder %s2384_s16, %s2384_s16 }
   0xf   :  { %p2391_p6 = por %p2390_p5, %p2389_p4 }
  0x11   :  { %p2392_p7 = pnand %p2391_p6, %p2385_p3 }
  0x13   :  { %2395 = shalt.err (!%p2392_p7)
}
  0x14   :  { %s2540_s17 = smov 128   ;;  %s2541_s18 = smov 8  }
  0x15   :  { %43 = dma.hbm_to_vmem [thread:$0]  %s2942_s2, 256, %s38_s28, [#allocation6], %s2540_s17, %s2540_s17, %s2541_s18  }
  0x16   :  { %s2396_s23 = scalar_lea.hbm %s2945_s5, 512 }
  0x17   :  { %p2397_p8 = scmp.ne.s32.totalorder %s2945_s5, %s2396_s23  ;;  %p2400_p9 = scmp.lt.u32.totalorder %s2396_s23, %s2945_s5 }
  0x19   :  { %p2402_p10 = pnand %p2400_p9, %p2397_p8 }
  0x1b   :  { %2405 = shalt.err (!%p2402_p10)
}
  0x1c   :  { %s2406_s29 = scalar_lea.vmem %s2598_s30, 512  ;;  %p2411_p12 = scmp.lt.s32.totalorder %s2598_s30, %s2598_s30 }
  0x1d   :  { %p2407_p11 = scmp.ne.s32.totalorder %s2598_s30, %s2406_s29  ;;  %p2412_p13 = scmp.lt.s32.totalorder %s2406_s29, %s2406_s29 }
  0x1f   :  { %p2413_p0 = por %p2412_p13, %p2411_p12 }
  0x21   :  { %p2414_p1 = pnand %p2413_p0, %p2407_p11 }
  0x23   :  { %2417 = shalt.err (!%p2414_p1)
}
  0x24   :  { %69 = dma.hbm_to_vmem [thread:$0]  %s2945_s5, 512, %s2598_s30, [#allocation9], %s2540_s17, %s2540_s17, %s2541_s18  }
  0x25   :  { %s2542_s9 = smov [#allocation2]   ;;  %s2543_s11 = smov [#allocation7]  }
  0x26   :  { %s25_s10 = sshll.u32 %s2542_s9, 4  ;;  %s49_s12 = sshll.u32 %s2543_s11, 4  ;;  %s26_s10 = int_to_ptr.vmem [resolvable:$true] %s25_s10  ;;  %s2635_s12 = int_to_ptr.vmem [resolvable:$true] %s49_s12 }
  0x27   :  { %s2418_s15 = scalar_lea.hbm %s2941_s1, 256 }
  0x28   :  { %p2419_p2 = scmp.ne.s32.totalorder %s2941_s1, %s2418_s15  ;;  %p2422_p3 = scmp.lt.u32.totalorder %s2418_s15, %s2941_s1 }
  0x2a   :  { %p2424_p4 = pnand %p2422_p3, %p2419_p2 }
  0x2c   :  { %2427 = shalt.err (!%p2424_p4)
}
  0x2d   :  { %s2428_s5 = scalar_lea.vmem %s26_s10, 256  ;;  %p2433_p6 = scmp.lt.s32.totalorder %s26_s10, %s26_s10 }
  0x2e   :  { %p2429_p5 = scmp.ne.s32.totalorder %s26_s10, %s2428_s5  ;;  %p2434_p7 = scmp.lt.s32.totalorder %s2428_s5, %s2428_s5 }
  0x30   :  { %p2435_p8 = por %p2434_p7, %p2433_p6 }
  0x32   :  { %p2436_p9 = pnand %p2435_p8, %p2429_p5 }
  0x34   :  { %2439 = shalt.err (!%p2436_p9)
}
  0x35   :  { %31 = dma.hbm_to_vmem [thread:$0]  %s2941_s1, 256, %s26_s10, [#allocation3], %s2540_s17, %s2540_s17, %s2541_s18  }
  0x36   :  { %s2440_s25 = scalar_lea.hbm %s2943_s3, 256 }
  0x37   :  { %p2441_p10 = scmp.ne.s32.totalorder %s2943_s3, %s2440_s25  ;;  %p2444_p11 = scmp.lt.u32.totalorder %s2440_s25, %s2943_s3 }
  0x39   :  { %p2446_p12 = pnand %p2444_p11, %p2441_p10 }
  0x3b   :  { %2449 = shalt.err (!%p2446_p12)
}
  0x3c   :  { %s2450_s28 = scalar_lea.vmem %s2635_s12, 256  ;;  %p2455_p0 = scmp.lt.s32.totalorder %s2635_s12, %s2635_s12 }
  0x3d   :  { %p2451_p13 = scmp.ne.s32.totalorder %s2635_s12, %s2450_s28  ;;  %p2456_p1 = scmp.lt.s32.totalorder %s2450_s28, %s2450_s28 }
  0x3f   :  { %p2457_p2 = por %p2456_p1, %p2455_p0 }
  0x41   :  { %p2458_p3 = pnand %p2457_p2, %p2451_p13 }
  0x43   :  { %2461 = shalt.err (!%p2458_p3)
}
  0x44   :  { %55 = dma.hbm_to_vmem [thread:$0]  %s2943_s3, 256, %s2635_s12, [#allocation6], %s2540_s17, %s2540_s17, %s2541_s18  }
  0x45   :  { %s2544_s10 = smov [#allocation10]   ;;  %s2545_s13 = smov [#allocation11]  }
  0x46   :  { %s75_s11 = sshll.u32 %s2544_s10, 4  ;;  %s87_s14 = sshll.u32 %s2545_s13, 4  ;;  %s76_s11 = int_to_ptr.vmem [resolvable:$true] %s75_s11  ;;  %s2672_s14 = int_to_ptr.vmem [resolvable:$true] %s87_s14 }
  0x47   :  { %s2462_s19 = scalar_lea.hbm %s2946_s6, 512 }
  0x48   :  { %p2463_p4 = scmp.ne.s32.totalorder %s2946_s6, %s2462_s19  ;;  %p2466_p5 = scmp.lt.u32.totalorder %s2462_s19, %s2946_s6 }
  0x4a   :  { %p2468_p6 = pnand %p2466_p5, %p2463_p4 }
  0x4c   :  { %2471 = shalt.err (!%p2468_p6)
}
  0x4d   :  { %s2472_s3 = scalar_lea.vmem %s76_s11, 512  ;;  %p2477_p8 = scmp.lt.s32.totalorder %s76_s11, %s76_s11 }
  0x4e   :  { %p2473_p7 = scmp.ne.s32.totalorder %s76_s11, %s2472_s3  ;;  %p2478_p9 = scmp.lt.s32.totalorder %s2472_s3, %s2472_s3 }
  0x50   :  { %p2479_p10 = por %p2478_p9, %p2477_p8 }
  0x52   :  { %p2480_p11 = pnand %p2479_p10, %p2473_p7 }
  0x54   :  { %2483 = shalt.err (!%p2480_p11)
}
  0x55   :  { %81 = dma.hbm_to_vmem [thread:$0]  %s2946_s6, 512, %s76_s11, [#allocation9], %s2540_s17, %s2540_s17, %s2541_s18  }
  0x56   :  { %s2484_s25 = scalar_lea.hbm %s2947_s7, 512 }
  0x57   :  { %p2485_p12 = scmp.ne.s32.totalorder %s2947_s7, %s2484_s25  ;;  %p2488_p13 = scmp.lt.u32.totalorder %s2484_s25, %s2947_s7 }
  0x59   :  { %p2490_p0 = pnand %p2488_p13, %p2485_p12 }
  0x5b   :  { %2493 = shalt.err (!%p2490_p0)
}
  0x5c   :  { %s2494_s28 = scalar_lea.vmem %s2672_s14, 512  ;;  %p2499_p2 = scmp.lt.s32.totalorder %s2672_s14, %s2672_s14 }
  0x5d   :  { %p2495_p1 = scmp.ne.s32.totalorder %s2672_s14, %s2494_s28  ;;  %p2500_p3 = scmp.lt.s32.totalorder %s2494_s28, %s2494_s28 }
  0x5f   :  { %p2501_p4 = por %p2500_p3, %p2499_p2 }
  0x61   :  { %p2502_p5 = pnand %p2501_p4, %p2495_p1 }
  0x63   :  { %2505 = shalt.err (!%p2502_p5)
}
  0x64   :  { %93 = dma.hbm_to_vmem [thread:$0]  %s2947_s7, 512, %s2672_s14, [#allocation12], %s2540_s17, %s2540_s17, %s2541_s18  }
  0x65   :  { %2528 = dma.done.wait [#allocation3], 256  }
  0x66   :  { %2529 = vsyncadd [#allocation3], 4294967040 }
  0x67   :  { %2530 = dma.done.wait [#allocation6], 512  }
  0x68   :  { %2531 = vsyncadd [#allocation6], 4294966784 }
  0x69   :  { %2532 = dma.done.wait [#allocation9], 1024  }
  0x6a   :  { %2533 = vsyncadd [#allocation9], 4294966272 }
  0x6b   :  { %2534 = dma.done.wait [#allocation12], 512  }
  0x6c   :  { %2535 = vsyncadd [#allocation12], 4294966784  ;;  %v118_v0 = vld [vmem:[%s2944_s4] sm:$0xff]  ;;  %v119_v1 = vld [vmem:[%s2944_s4 + $0x8] sm:$0xff]  ;;  %vm122_vm0 = vcmask 261120   ;;  %v2546_v16 = vmov 0.0   ;;  %v376_v34 = vlaneseq }
  0x6d   :  { %v206_v2 = vld [vmem:[#allocation8] sm:$0xff]  ;;  %v2296_v3 = vpack.c.bf16 %v119_v1, %v118_v0  ;;  %v207_v4 = vld [vmem:[#allocation8 + $0x8] sm:$0xff]  ;;  %v208_v9 = vld [vmem:[#allocation8 + $0x10] sm:$0xff]  ;;  %vm2547_vm1 = vmmov 0   ;;  %v2548_v18 = vmov 0   ;;  %vm392_vm2 = vcmask 64512  }
  0x6e   :  { %v120_v5 = vld [vmem:[%s2944_s4 + $0x10] sm:$0xff]  ;;  %v121_v6 = vld [vmem:[%s2944_s4 + $0x18] sm:$0xff]  ;;  %v2304_v7 = vpack.c.bf16 %v207_v4, %v206_v2  ;;  %v209_v10 = vld [vmem:[#allocation8 + $0x18] sm:$0xff]  ;;  %2341 = vset.pattern.permute.xlu0 %v2548_v18  ;;  %v2761_v35 = vand.u32 127, %v376_v34  ;;  %s2550_s5 = smov 112   ;;  %s2551_s30 = smov 104  }
  0x6f   :  { %v2300_v8 = vpack.c.bf16 %v121_v6, %v120_v5  ;;  %v112_v11 = vld [vmem:[#allocation2] sm:$0xff]  ;;  %2297 = vmatprep.subr.bf16.mxu0 %v2296_v3  ;;  %v2308_v12 = vpack.c.bf16 %v209_v10, %v208_v9  ;;  %v114_v13 = vld [vmem:[#allocation5] sm:$0xff]  ;;  %v113_v14 = vld [vmem:[#allocation2 + $0x8] sm:$0xff]  ;;  %s2552_s3 = smov [#allocation13]  }
  0x70   :  { %2171 = vmatprep.mubr.msk.f32.mxu0 %vm122_vm0, %v112_v11  ;;  %2305 = vmatprep.subr.bf16.mxu1 %v2304_v7  ;;  %v115_v15 = vld [vmem:[#allocation5 + $0x8] sm:$0xff]  ;;  %v378_v17 = vld [vmem:[%s2940_s0] sm:$0xff]  ;;  %v379_v19 = vld [vmem:[%s2940_s0 + $0x8] sm:$0xff]  ;;  %s2549_s0 = smov 120   ;;  %s2048_s12 = sshll.u32 %s2552_s3, 4  ;;  %s2049_s12 = int_to_ptr.vmem [resolvable:$true] %s2048_s12 }
  0x71   :  { %2299 = vmatpush3.bf16.msra.mxu0 %v2296_v3  ;;  %2307 = vmatpush3.bf16.msra.mxu1 %v2304_v7  ;;  %v291_v26 = vld [vmem:[#allocation10] sm:$0xff]  ;;  %v292_v27 = vld [vmem:[#allocation10 + $0x8] sm:$0xff]  ;;  %v293_v28 = vld [vmem:[#allocation10 + $0x10] sm:$0xff]  ;;  %s2506_s22 = scalar_lea.vmem %s2049_s12, 256  ;;  %p2511_p7 = scmp.lt.s32.totalorder %s2049_s12, %s2049_s12 }
  0x72   :  { %2301 = vmatprep.subr.bf16.mxu0 %v2300_v8  ;;  %2309 = vmatprep.subr.bf16.mxu1 %v2308_v12  ;;  %v2312_v29 = vpack.c.bf16 %v292_v27, %v291_v26  ;;  %v294_v30 = vld [vmem:[#allocation10 + $0x18] sm:$0xff]  ;;  %v116_v31 = vld [vmem:[#allocation7] sm:$0xff]  ;;  %p2507_p6 = scmp.ne.s32.totalorder %s2049_s12, %s2506_s22  ;;  %p2512_p8 = scmp.lt.s32.totalorder %s2506_s22, %s2506_s22 }
  0x73   :  { %2182 = vmatprep.mubr.msk.f32.mxu1 %vm122_vm0, %v114_v13  ;;  %381 = vperm.xlu0 %2341, %v378_v17   ;;  %v2316_v32 = vpack.c.bf16 %v294_v30, %v293_v28  ;;  %v117_v33 = vld [vmem:[#allocation7 + $0x8] sm:$0xff] }
  0x74   :  { %p2513_p9 = por %p2512_p8, %p2511_p7 }
  0x75   :  { %2303 = vmatpush3.bf16.msra.mxu0 %v2300_v8  ;;  %2311 = vmatpush3.bf16.msra.mxu1 %v2308_v12 }
  0x76   :  { %2196 = vmatprep.subr.mxu1 %v2546_v16  ;;  %2313 = vmatprep.subr.bf16.mxu0 %v2312_v29  ;;  %p2514_p10 = pnand %p2513_p9, %p2507_p6 }
  0x77   :  { %384 = vperm.xlu0 %2341, %v379_v19  }
  0x78   :  { %2172 = vmatmul.mubr.msk.f32.vlgmr.msra.gmra.mrb[0].mxu0 %vm122_vm0, %v113_v14  ;;  %2183 = vmatmul.mubr.msk.f32.vlgmr.msra.gmra.mrb[0].mxu1 %vm122_vm0, %v115_v15 }
  0x79   :  { %2198 = vmatprep.mubr.msk.f32.mxu1 %vm2547_vm1, %v2546_v16  ;;  %2193 = vmatprep.mubr.msk.f32.mxu0 %vm122_vm0, %v116_v31 }
  0x7a   :  { %2315 = vmatpush3.bf16.msra.mxu0 %v2312_v29 }
  0x7b   :  { %2317 = vmatprep.subr.bf16.mxu0 %v2316_v32 }
  0x7e   :  { %2319 = vmatpush3.bf16.msra.mxu0 %v2316_v32 }
  0x7f   :  { %2216 = vmatprep.subr.mxu0 %v2546_v16 }
  0x81   :  { %2194 = vmatmul.mubr.msk.f32.vlgmr.msra.gmra.mrb[2].mxu0 %vm122_vm0, %v117_v33 }
  0x82   :  { %2218 = vmatprep.mubr.msk.f32.mxu0 %vm2547_vm1, %v2546_v16 }
  0xf2   :  { %v2763_v36 = vpop.permute.xlu0 %381 }
  0xf3   :  { %vm386_vm3 = vcmp.lt.s32.totalorder %v2761_v35, %v2763_v36 }
  0xf6   :  { %v2767_v38 = vpop.permute.xlu0 %384 }
  0xf7   :  { %vm387_vm4 = vcmp.lt.s32.totalorder %v2761_v35, %v2767_v38 }
 0x14b   :  { %v2173_v20 = vpop.f32.mrb[0].mxu0  ;;  %v2734_v21 = vpop.f32.mrb[0].mxu1 }
 0x14c   :  { %v195_v22 = vpop.f32.mrb[1].mxu0  ;;  %v2738_v24 = vpop.f32.mrb[1].mxu1  ;;  %v2749_v25 = vmul.f32 0.35355338, %v2173_v20 }
 0x14d   :  { %v2736_v23 = vmul.f32 0.35355338, %v195_v22  ;;  %2197 = vmatpush3.xpose.msk.msra.mxu1 %vm392_vm2, %v2738_v24 }
 0x14e   :  { %2201 = vmatprep.subr.mxu1 %v2546_v16 }
 0x150   :  { %2199 = vmatmul.mubr.msk.f32.vlgmr.msra.gmra.mrb[2].mxu1 %vm392_vm2, %v2736_v23 }
 0x151   :  { %2202 = vmatpush3.xpose.msk.msra.mxu1 %vm392_vm2, %v2734_v21  ;;  %2203 = vmatprep.mubr.msk.f32.mxu1 %vm2547_vm1, %v2546_v16 }
 0x152   :  { %2206 = vmatprep.subr.mxu1 %v2546_v16 }
 0x154   :  { %2204 = vmatmul.mubr.msk.f32.vlgmr.msra.gmra.mrb[4].mxu1 %vm392_vm2, %v2749_v25  ;;  %v2785_v56 = vpop.f32.mrb[2].mxu0 }
 0x155   :  { %2208 = vmatprep.mubr.msk.f32.mxu1 %vm2547_vm1, %v2546_v16  ;;  %v2787_v57 = vpop.f32.mrb[3].mxu0 }
 0x156   :  { %2207 = vmatpush3.msra.mxu1 %v2787_v57 }
 0x157   :  { %2211 = vmatprep.subr.mxu1 %v2546_v16 }
 0x223   :  { %v465_v37 = vpop.f32.mrb[2].mxu1 }
 0x224   :  { %v545_v39 = vsel %vm386_vm3, %v465_v37, -1000000.0  ;;  %v2200_v40 = vpop.f32.mrb[3].mxu1 }
 0x225   :  { %v547_v41 = vsel %vm392_vm2, %v545_v39, -inf }
 0x226   :  { %548 = vmax.xlane.f32.xlu1 %v547_v41 }
 0x227   :  { %v541_v42 = vpop.f32.mrb[4].mxu1 }
 0x228   :  { %v546_v43 = vsel %vm387_vm4, %v541_v42, -1000000.0  ;;  %v2205_v44 = vpop.f32.mrb[5].mxu1 }
 0x229   :  { %v550_v45 = vsel %vm392_vm2, %v546_v43, -inf }
 0x22a   :  { %551 = vmax.xlane.f32.xlu1 %v550_v45 }
 0x23b   :  { %795 = vrot.lane.b32.xlu1 %v2734_v21, %s2549_s0 }
 0x2b3   :  { %v549_v46 = vpop.xlane.xlu1 %548 }
 0x2b4   :  { %v553_v47 = vsub.f32 %v545_v39, %v549_v46 }
 0x2b6   :  { %v555_v48 = vmul.f32 1.442695, %v553_v47 }
 0x2b7   :  { %v552_v49 = vpop.xlane.xlu1 %551 }
 0x2b8   :  { %2342 = vpow2.f32 %v555_v48  ;;  %v554_v50 = vsub.f32 %v546_v43, %v552_v49 }
 0x2ba   :  { %v557_v51 = vmul.f32 1.442695, %v554_v50 }
 0x2bb   :  { %v796_v58 = vpop.permute.xlu1 %795 }
 0x2bc   :  { %2344 = vpow2.f32 %v557_v51 }
 0x2c2   :  { %v2343_v52 = vpop.eup %2342 }
 0x2c3   :  { %v559_v53 = vsel %vm392_vm2, %v2343_v52, 0.0 }
 0x2c4   :  { %560 = vadd.xlane.f32.xlu0 %v559_v53 }
 0x2c6   :  { %v2345_v54 = vpop.eup %2344 }
 0x2c7   :  { %v562_v55 = vsel %vm392_vm2, %v2345_v54, 0.0 }
 0x2c8   :  { %563 = vadd.xlane.f32.xlu1 %v562_v55 }
 0x2d9   :  { %793 = vrot.lane.b32.xlu1 %v2749_v25, %s2549_s0 }
 0x2dd   :  { %717 = vrot.lane.b32.xlu1 %v2738_v24, %s2549_s0 }
 0x2e1   :  { %715 = vrot.lane.b32.xlu1 %v2736_v23, %s2549_s0 }
 0x351   :  { %v561_v59 = vpop.xlane.xlu0 %560 }
 0x352   :  { %2346 = vrcp.f32 %v561_v59  ;;  %v388_v59 = vld [vmem:[#allocation11] sm:$0xff] }
 0x355   :  { %v564_v60 = vpop.xlane.xlu1 %563 }
 0x356   :  { %2348 = vrcp.f32 %v564_v60 }
 0x359   :  { %v794_v61 = vpop.permute.xlu1 %793 }
 0x35c   :  { %v2347_v62 = vpop.eup %2346 }
 0x35d   :  { %v567_v63 = vmul.f32 %v2347_v62, %v2343_v52  ;;  %v718_v0 = vpop.permute.xlu1 %717 }
 0x35e   :  { %2217 = vmatpush3.xpose.msk.msra.mxu0 %vm392_vm2, %v718_v0 }
 0x35f   :  { %2209 = vmatmul.mubr.msk.f32.vlgmr.msra.gmra.mrb[6].mxu1 %vm392_vm2, %v567_v63  ;;  %2226 = vmatprep.subr.mxu0 %v2546_v16 }
 0x360   :  { %v2349_v1 = vpop.eup %2348  ;;  %2212 = vmatpush3.msra.mxu1 %v2785_v56  ;;  %2213 = vmatprep.mubr.msk.f32.mxu1 %vm2547_vm1, %v2546_v16 }
 0x361   :  { %v568_v2 = vmul.f32 %v2349_v1, %v2345_v54  ;;  %v716_v3 = vpop.permute.xlu1 %715  ;;  %2221 = vmatprep.subr.mxu1 %v2546_v16 }
 0x362   :  { %2219 = vmatmul.mubr.msk.f32.vlgmr.msra.gmra.mrb[4].mxu0 %vm392_vm2, %v716_v3 }
 0x363   :  { %2214 = vmatmul.mubr.msk.f32.vlgmr.msra.gmra.mrb[8].mxu1 %vm392_vm2, %v568_v2  ;;  %2228 = vmatprep.mubr.msk.f32.mxu0 %vm2547_vm1, %v2546_v16 }
 0x364   :  { %2223 = vmatprep.mubr.msk.f32.mxu1 %vm2547_vm1, %v2546_v16 }
 0x367   :  { %2222 = vmatpush3.xpose.msk.msra.mxu1 %vm392_vm2, %v796_v58  ;;  %v389_v58 = vld [vmem:[#allocation11 + $0x8] sm:$0xff] }
 0x368   :  { %2231 = vmatprep.subr.mxu1 %v2546_v16 }
 0x36a   :  { %2224 = vmatmul.mubr.msk.f32.vlgmr.msra.gmra.mrb[10].mxu1 %vm392_vm2, %v794_v61 }
 0x36b   :  { %2233 = vmatprep.mubr.msk.f32.mxu1 %vm2547_vm1, %v2546_v16 }
 0x432   :  { %v2813_v4 = vpop.f32.mrb[6].mxu1 }
 0x433   :  { %v2210_v5 = vpop.f32.mrb[7].mxu1 }
 0x435   :  { %v789_v6 = vpop.f32.mrb[4].mxu0 }
 0x436   :  { %v2815_v7 = vpop.f32.mrb[8].mxu1  ;;  %v2220_v8 = vpop.f32.mrb[5].mxu0  ;;  %v871_v22 = vsel %vm386_vm3, %v789_v6, -1000000.0 }
 0x437   :  { %v2215_v9 = vpop.f32.mrb[9].mxu1  ;;  %v873_v26 = vsel %vm392_vm2, %v871_v22, -inf }
 0x43d   :  { %v867_v10 = vpop.f32.mrb[10].mxu1 }
 0x43e   :  { %v872_v11 = vsel %vm387_vm4, %v867_v10, -1000000.0  ;;  %v2225_v12 = vpop.f32.mrb[11].mxu1 }
 0x43f   :  { %v876_v13 = vsel %vm392_vm2, %v872_v11, -inf }
 0x440   :  { %877 = vmax.xlane.f32.xlu0 %v876_v13 }
 0x456   :  { %973 = vrot.lane.b32.xlu0 %v2785_v56, %s2549_s0 }
 0x45a   :  { %1213 = vrot.lane.b32.xlu0 %v2738_v24, %s2550_s5 }
 0x45e   :  { %1211 = vrot.lane.b32.xlu0 %v2736_v23, %s2550_s5 }
 0x462   :  { %1291 = vrot.lane.b32.xlu0 %v2734_v21, %s2550_s5 }
 0x466   :  { %1289 = vrot.lane.b32.xlu0 %v2749_v25, %s2550_s5 }
 0x4cd   :  { %v878_v14 = vpop.xlane.xlu0 %877 }
 0x4ce   :  { %v880_v15 = vsub.f32 %v872_v11, %v878_v14 }
 0x4d0   :  { %v883_v17 = vmul.f32 1.442695, %v880_v15 }
 0x4d1   :  { %v974_v18 = vpop.permute.xlu0 %973 }
 0x4d2   :  { %2350 = vpow2.f32 %v883_v17  ;;  %2232 = vmatpush3.msra.mxu1 %v974_v18 }
 0x4d3   :  { %2246 = vmatprep.subr.mxu1 %v2546_v16 }
 0x4d5   :  { %v1214_v28 = vpop.permute.xlu0 %1213 }
 0x4d9   :  { %v1212_v33 = vpop.permute.xlu0 %1211 }
 0x4dc   :  { %v2351_v19 = vpop.eup %2350 }
 0x4dd   :  { %v888_v20 = vsel %vm392_vm2, %v2351_v19, 0.0  ;;  %v1292_v39 = vpop.permute.xlu0 %1291 }
 0x4de   :  { %889 = vadd.xlane.f32.xlu1 %v888_v20 }
 0x4e1   :  { %v1290_v42 = vpop.permute.xlu0 %1289 }
 0x4e2   :  { %874 = vmax.xlane.f32.xlu1 %v873_v26 }
 0x4f3   :  { %896 = vrot.lane.b32.xlu1 %v2787_v57, %s2549_s0 }
 0x56b   :  { %v890_v27 = vpop.xlane.xlu1 %889 }
 0x56c   :  { %2352 = vrcp.f32 %v890_v27 }
 0x56f   :  { %v875_v29 = vpop.xlane.xlu1 %874 }
 0x570   :  { %v879_v30 = vsub.f32 %v871_v22, %v875_v29 }
 0x572   :  { %v881_v31 = vmul.f32 1.442695, %v879_v30 }
 0x573   :  { %v897_v32 = vpop.permute.xlu1 %896 }
 0x574   :  { %2354 = vpow2.f32 %v881_v31  ;;  %2227 = vmatpush3.msra.mxu0 %v897_v32 }
 0x575   :  { %2236 = vmatprep.subr.mxu0 %v389_v58 }
 0x576   :  { %v2353_v34 = vpop.eup %2352 }
 0x577   :  { %v894_v37 = vmul.f32 %v2353_v34, %v2351_v19 }
 0x579   :  { %2234 = vmatmul.mubr.msk.f32.vlgmr.msra.gmra.mrb[12].mxu1 %vm392_vm2, %v894_v37 }
 0x57a   :  { %2247 = vmatpush3.xpose.msk.msra.mxu1 %vm392_vm2, %v1214_v28  ;;  %2248 = vmatprep.mubr.msk.f32.mxu1 %vm2547_vm1, %v2546_v16 }
 0x57b   :  { %2251 = vmatprep.subr.mxu1 %v2546_v16 }
 0x57d   :  { %2249 = vmatmul.mubr.msk.f32.vlgmr.msra.gmra.mrb[14].mxu1 %vm392_vm2, %v1212_v33 }
 0x57e   :  { %v2355_v40 = vpop.eup %2354  ;;  %2252 = vmatpush3.xpose.msk.msra.mxu1 %vm392_vm2, %v1292_v39  ;;  %2253 = vmatprep.mubr.msk.f32.mxu1 %vm2547_vm1, %v2546_v16 }
 0x57f   :  { %v885_v41 = vsel %vm392_vm2, %v2355_v40, 0.0  ;;  %2261 = vmatprep.subr.mxu1 %v2546_v16 }
 0x580   :  { %886 = vadd.xlane.f32.xlu0 %v885_v41 }
 0x581   :  { %2254 = vmatmul.mubr.msk.f32.vlgmr.msra.gmra.mrb[16].mxu1 %vm392_vm2, %v1290_v42 }
 0x582   :  { %2263 = vmatprep.mubr.msk.f32.mxu1 %vm2547_vm1, %v2546_v16 }
 0x60d   :  { %v887_v43 = vpop.xlane.xlu0 %886 }
 0x60e   :  { %2356 = vrcp.f32 %v887_v43 }
 0x618   :  { %v2357_v44 = vpop.eup %2356 }
 0x619   :  { %v893_v45 = vmul.f32 %v2357_v44, %v2355_v40 }
 0x61b   :  { %2229 = vmatmul.mubr.msk.f32.vlgmr.msra.gmra.mrb[6].mxu0 %vm392_vm2, %v893_v45 }
 0x61c   :  { %2237 = vmatpush3.msra.mxu0 %v389_v58 }
 0x61d   :  { %2241 = vmatprep.subr.mxu0 %v388_v59 }
 0x64c   :  { %v1045_v46 = vpop.f32.mrb[12].mxu1 }
 0x64d   :  { %v2235_v47 = vpop.f32.mrb[13].mxu1 }
 0x64e   :  { %v391_v47 = vld [vmem:[#allocation11 + $0x18] sm:$0xff] }
 0x650   :  { %v1285_v48 = vpop.f32.mrb[14].mxu1 }
 0x651   :  { %v1367_v49 = vsel %vm386_vm3, %v1285_v48, -1000000.0  ;;  %v2250_v50 = vpop.f32.mrb[15].mxu1 }
 0x652   :  { %v1369_v51 = vsel %vm392_vm2, %v1367_v49, -inf }
 0x653   :  { %1370 = vmax.xlane.f32.xlu1 %v1369_v51 }
 0x654   :  { %v1363_v52 = vpop.f32.mrb[16].mxu1 }
 0x655   :  { %v1368_v53 = vsel %vm387_vm4, %v1363_v52, -1000000.0  ;;  %v2255_v54 = vpop.f32.mrb[17].mxu1 }
 0x656   :  { %v1372_v55 = vsel %vm392_vm2, %v1368_v53, -inf }
 0x657   :  { %1373 = vmax.xlane.f32.xlu0 %v1372_v55 }
 0x664   :  { %1467 = vrot.lane.b32.xlu1 %v2785_v56, %s2550_s5 }
 0x668   :  { %1626 = vrot.lane.b32.xlu1 %v2736_v23, %s2551_s30 }
 0x6e0   :  { %v1371_v60 = vpop.xlane.xlu1 %1370 }
 0x6e1   :  { %v1375_v61 = vsub.f32 %v1367_v49, %v1371_v60 }
 0x6e3   :  { %v1377_v62 = vmul.f32 1.442695, %v1375_v61 }
 0x6e4   :  { %v1468_v63 = vpop.permute.xlu1 %1467  ;;  %v1374_v0 = vpop.xlane.xlu0 %1373 }
 0x6e5   :  { %2358 = vpow2.f32 %v1377_v62  ;;  %v1376_v1 = vsub.f32 %v1368_v53, %v1374_v0  ;;  %2262 = vmatpush3.msra.mxu1 %v1468_v63 }
 0x6e6   :  { %2271 = vmatprep.subr.mxu1 %v2546_v16 }
 0x6e7   :  { %v1379_v2 = vmul.f32 1.442695, %v1376_v1 }
 0x6e9   :  { %2360 = vpow2.f32 %v1379_v2 }
 0x6ee   :  { %v968_v3 = vpop.f32.mrb[6].mxu0 }
 0x6ef   :  { %v2359_v5 = vpop.eup %2358  ;;  %v2230_v23 = vpop.f32.mrb[7].mxu0  ;;  %2238 = vmatprep.mubr.msk.f32.mxu0 %vm392_vm2, %v968_v3 }
 0x6f0   :  { %2239 = vmatmul.mubr.msk.f32.vlgmr.msra.gmra.mrb[8].mxu0 %vm392_vm2, %v1045_v46  ;;  %v1381_v6 = vsel %vm392_vm2, %v2359_v5, 0.0 }
 0x6f1   :  { %2243 = vmatprep.mubr.msk.f32.mxu0 %vm392_vm2, %v2813_v4  ;;  %1382 = vadd.xlane.f32.xlu0 %v1381_v6 }
 0x6f2   :  { %2242 = vmatpush3.msra.mxu0 %v388_v59 }
 0x6f3   :  { %v2361_v8 = vpop.eup %2360  ;;  %2256 = vmatprep.subr.mxu0 %v2546_v16 }
 0x6f4   :  { %v1384_v9 = vsel %vm392_vm2, %v2361_v8, 0.0 }
 0x6f5   :  { %1385 = vadd.xlane.f32.xlu0 %v1384_v9 }
 0x6f8   :  { %2244 = vmatmul.mubr.msk.f32.vlgmr.msra.gmra.mrb[8].mxu0 %vm392_vm2, %v2815_v7  ;;  %v390_v7 = vld [vmem:[#allocation11 + $0x10] sm:$0xff] }
 0x6f9   :  { %2258 = vmatprep.mubr.msk.f32.mxu0 %vm2547_vm1, %v2546_v16 }
 0x70b   :  { %1391 = vrot.lane.b32.xlu0 %v2787_v57, %s2550_s5 }
 0x70f   :  { %1628 = vrot.lane.b32.xlu0 %v2738_v24, %s2551_s30 }
 0x713   :  { %1706 = vrot.lane.b32.xlu0 %v2734_v21, %s2551_s30 }
 0x717   :  { %1704 = vrot.lane.b32.xlu0 %v2749_v25, %s2551_s30  ;;  %v1627_v25 = vpop.permute.xlu1 %1626 }
 0x77e   :  { %v1383_v4 = vpop.xlane.xlu0 %1382 }
 0x77f   :  { %2362 = vrcp.f32 %v1383_v4 }
 0x782   :  { %v1386_v10 = vpop.xlane.xlu0 %1385 }
 0x783   :  { %2364 = vrcp.f32 %v1386_v10 }
 0x786   :  { %v1392_v11 = vpop.permute.xlu0 %1391 }
 0x787   :  { %2257 = vmatpush3.msra.mxu0 %v1392_v11 }
 0x788   :  { %2266 = vmatprep.subr.mxu0 %v390_v7 }
 0x789   :  { %v2363_v12 = vpop.eup %2362 }
 0x78a   :  { %v1389_v13 = vmul.f32 %v2363_v12, %v2359_v5  ;;  %v1629_v21 = vpop.permute.xlu0 %1628 }
 0x78c   :  { %2259 = vmatmul.mubr.msk.f32.vlgmr.msra.gmra.mrb[10].mxu0 %vm392_vm2, %v1389_v13 }
 0x78d   :  { %v2365_v14 = vpop.eup %2364  ;;  %2267 = vmatpush3.msra.mxu0 %v390_v7 }
 0x78e   :  { %v1390_v24 = vmul.f32 %v2365_v14, %v2361_v8  ;;  %2276 = vmatprep.subr.mxu0 %v2546_v16  ;;  %v1707_v18 = vpop.permute.xlu0 %1706 }
 0x790   :  { %2264 = vmatmul.mubr.msk.f32.vlgmr.msra.gmra.mrb[18].mxu1 %vm392_vm2, %v1390_v24 }
 0x791   :  { %2272 = vmatpush3.xpose.msk.msra.mxu1 %vm392_vm2, %v1629_v21  ;;  %2273 = vmatprep.mubr.msk.f32.mxu1 %vm2547_vm1, %v2546_v16 }
 0x792   :  { %2281 = vmatprep.subr.mxu1 %v2546_v16  ;;  %v1705_v22 = vpop.permute.xlu0 %1704 }
 0x794   :  { %2274 = vmatmul.mubr.msk.f32.vlgmr.msra.gmra.mrb[20].mxu1 %vm392_vm2, %v1627_v25 }
 0x795   :  { %2283 = vmatprep.mubr.msk.f32.mxu1 %vm2547_vm1, %v2546_v16 }
 0x85f   :  { %v1463_v15 = vpop.f32.mrb[10].mxu0 }
 0x860   :  { %v2260_v17 = vpop.f32.mrb[11].mxu0  ;;  %2268 = vmatprep.mubr.msk.f32.mxu0 %vm392_vm2, %v1463_v15 }
 0x863   :  { %v1539_v19 = vpop.f32.mrb[18].mxu1 }
 0x864   :  { %v2265_v20 = vpop.f32.mrb[19].mxu1  ;;  %2269 = vmatmul.mubr.msk.f32.vlgmr.msra.gmra.mrb[8].mxu0 %vm392_vm2, %v1539_v19 }
 0x865   :  { %2277 = vmatpush3.xpose.msk.msra.mxu0 %vm392_vm2, %v1707_v18  ;;  %2278 = vmatprep.mubr.msk.f32.mxu0 %vm2547_vm1, %v2546_v16 }
 0x866   :  { %2286 = vmatprep.subr.mxu0 %v2546_v16 }
 0x867   :  { %v1700_v26 = vpop.f32.mrb[20].mxu1 }
 0x868   :  { %v1782_v27 = vsel %vm386_vm3, %v1700_v26, -1000000.0  ;;  %v2275_v28 = vpop.f32.mrb[21].mxu1  ;;  %2279 = vmatmul.mubr.msk.f32.vlgmr.msra.gmra.mrb[12].mxu0 %vm392_vm2, %v1705_v22 }
 0x869   :  { %v1784_v29 = vsel %vm392_vm2, %v1782_v27, -inf  ;;  %2288 = vmatprep.mubr.msk.f32.mxu0 %vm2547_vm1, %v2546_v16 }
 0x86a   :  { %1785 = vmax.xlane.f32.xlu1 %v1784_v29 }
 0x8f7   :  { %v1786_v30 = vpop.xlane.xlu1 %1785 }
 0x8f8   :  { %v1790_v31 = vsub.f32 %v1782_v27, %v1786_v30 }
 0x8fa   :  { %v1792_v32 = vmul.f32 1.442695, %v1790_v31 }
 0x8fc   :  { %2366 = vpow2.f32 %v1792_v32 }
 0x906   :  { %v2367_v39 = vpop.eup %2366 }
 0x907   :  { %v1796_v40 = vsel %vm392_vm2, %v2367_v39, 0.0 }
 0x93b   :  { %v1778_v33 = vpop.f32.mrb[12].mxu0 }
 0x93c   :  { %v1783_v34 = vsel %vm387_vm4, %v1778_v33, -1000000.0  ;;  %v2280_v36 = vpop.f32.mrb[13].mxu0 }
 0x93d   :  { %v1787_v37 = vsel %vm392_vm2, %v1783_v34, -inf }
 0x93e   :  { %1788 = vmax.xlane.f32.xlu0 %v1787_v37 }
 0x942   :  { %1797 = vadd.xlane.f32.xlu0 %v1796_v40 }
 0x958   :  { %1806 = vrot.lane.b32.xlu0 %v2787_v57, %s2551_s30 }
 0x9cb   :  { %v1789_v16 = vpop.xlane.xlu0 %1788 }
 0x9cc   :  { %v1791_v41 = vsub.f32 %v1783_v34, %v1789_v16 }
 0x9ce   :  { %v1794_v42 = vmul.f32 1.442695, %v1791_v41 }
 0x9cf   :  { %v1798_v43 = vpop.xlane.xlu0 %1797 }
 0x9d0   :  { %2368 = vpow2.f32 %v1794_v42 }
 0x9d1   :  { %2370 = vrcp.f32 %v1798_v43 }
 0x9d3   :  { %v1807_v44 = vpop.permute.xlu0 %1806 }
 0x9d4   :  { %2282 = vmatpush3.msra.mxu1 %v1807_v44 }
 0x9da   :  { %v2369_v35 = vpop.eup %2368 }
 0x9db   :  { %v2371_v38 = vpop.eup %2370  ;;  %v1799_v45 = vsel %vm392_vm2, %v2369_v35, 0.0 }
 0x9dc   :  { %v1804_v46 = vmul.f32 %v2371_v38, %v2367_v39  ;;  %1800 = vadd.xlane.f32.xlu1 %v1799_v45 }
 0x9de   :  { %2284 = vmatmul.mubr.msk.f32.vlgmr.msra.gmra.mrb[22].mxu1 %vm392_vm2, %v1804_v46 }
 0x9ed   :  { %1882 = vrot.lane.b32.xlu1 %v2785_v56, %s2551_s30 }
 0xa69   :  { %v1801_v57 = vpop.xlane.xlu1 %1800 }
 0xa6a   :  { %2372 = vrcp.f32 %v1801_v57 }
 0xa6d   :  { %v1883_v48 = vpop.permute.xlu1 %1882 }
 0xa6e   :  { %2287 = vmatpush3.msra.mxu0 %v1883_v48 }
 0xa6f   :  { %2291 = vmatprep.subr.mxu0 %v391_v47 }
 0xa74   :  { %v2373_v49 = vpop.eup %2372 }
 0xa75   :  { %v1805_v50 = vmul.f32 %v2373_v49, %v2369_v35 }
 0xa77   :  { %2289 = vmatmul.mubr.msk.f32.vlgmr.msra.gmra.mrb[14].mxu0 %vm392_vm2, %v1805_v50 }
 0xa78   :  { %2292 = vmatpush3.msra.mxu0 %v391_v47 }
 0xab1   :  { %v1878_v51 = vpop.f32.mrb[22].mxu1 }
 0xab2   :  { %v2285_v52 = vpop.f32.mrb[23].mxu1  ;;  %2293 = vmatprep.mubr.msk.f32.mxu0 %vm392_vm2, %v1878_v51 }
 0xb4a   :  { %v1954_v53 = vpop.f32.mrb[14].mxu0 }
 0xb4b   :  { %v2290_v54 = vpop.f32.mrb[15].mxu0  ;;  %2294 = vmatmul.mubr.msk.f32.vlgmr.msra.gmra.mrb[8].mxu0 %vm392_vm2, %v1954_v53 }
 0xc1e   :  { %v2295_v56 = vpop.f32.mrb[8].mxu0 }
 0xc1f   :  { %2042 = vst.msk [vmem:[#allocation13 + $0x8] sm:$0xff] %vm122_vm0, %v2295_v56  ;;  %v2030_v55 = vpop.f32.mrb[9].mxu0 }
 0xc20   :  { %2041 = vst.msk [vmem:[#allocation13] sm:$0xff] %vm122_vm0, %v2030_v55 }
 0xc21   :  { %2517 = shalt.err (!%p2514_p10)
}
 0xc22   :  { %s2518_s25 = scalar_lea.hbm %s2948_s8, 256 }
 0xc23   :  { %p2519_p11 = scmp.ne.s32.totalorder %s2948_s8, %s2518_s25  ;;  %p2522_p12 = scmp.lt.u32.totalorder %s2518_s25, %s2948_s8 }
 0xc25   :  { %p2524_p13 = pnand %p2522_p12, %p2519_p11 }
 0xc27   :  { %2527 = shalt.err (!%p2524_p13)
}
 0xc28   :  { %2054 = dma.vmem_to_hbm [thread:$0]  %s2049_s12, 256, %s2948_s8, [#allocation4], %s2540_s17, %s2540_s17, %s2541_s18  }
 0xc29   :  { %2536 = dma.done.wait [#allocation4], 256  }
 0xc2a   :  { %2537 = vsyncadd [#allocation4], 4294967040 }
 0xc2b   :  { %2058 = vsyncpa [#allocation3], 1 }
 0xc2c   :  { %2059 = vsyncpa [#allocation6], 1 }
 0xc2d   :  { %2060 = vsyncpa [#allocation9], 1 }
 0xc2e   :  { %2061 = vsyncpa [#allocation12], 1 }
 0xc2f   :  { %2062 = vsyncpa [#allocation4], 1 }

</bundles_post_ra>
